<compile_context>
chip_gen: v6e
topology: v6e:2x2x1
jax: 0.10.0
libtpu: 0.0.40
codegen_flags: <defaults>
</compile_context>

<pallas_src>
import functools

import jax
import jax.numpy as jnp
import numpy as np
from jax.experimental import pallas as pl
from jax.experimental.pallas import tpu as pltpu


def _round_up(x, m):
    return ((x + m - 1) // m) * m


def _encode_li_kernel(x_ref, w1_ref, b1_ref, w2_ref, b2_ref, out_ref):
    # x_ref: (TM, D), w1_ref: (D, H), b1_ref: (1, H)
    # w2_ref: (C, H)  (PyTorch (out, in) layout), b2_ref: (C, 1)
    # out_ref: (C, TM)  -- transposed so the large batch axis is the lane dim
    x = x_ref[...]
    h = jnp.dot(x, w1_ref[...], preferred_element_type=jnp.float32) + b1_ref[...]
    h = jnp.maximum(h, 0.0)  # (TM, H) f32

    # Second matmul computed transposed: (C, TM) = (h @ w2^T)^T, contracting H.
    # Both operands contract on their last dim (a @ b.T form) -> MXU-native.
    e_t = jax.lax.dot_general(
        w2_ref[...], h,
        dimension_numbers=(((1,), (1,)), ((), ())),
        preferred_element_type=jnp.float32,
    )  # (C, TM)
    e_t = jnp.maximum(e_t + b2_ref[...], 0.0)
    out_ref[...] = e_t.astype(out_ref.dtype)


@functools.partial(jax.jit, static_argnames=("tm_cap",))
def ae_encode_li(x, kparams, *, tm_cap=4096):
    """AE_encode_li forward: relu(fc_2(relu(fc_1(x)))).

    x:        (B, data_length) float32
    kparams:  output of prepare_params(): (w1 (D,Hp), b1 (1,Hp), w2 (C,Hp), b2 (C,1))
    returns:  (B, class_num) float32
    """
    w1, b1, w2, b2 = kparams
    B, D = x.shape
    H = w1.shape[1]
    C = w2.shape[0]

    # Batch tile: it is the lane dim of the transposed output, so keep it a multiple
    # of 128 unless a single tile covers the whole batch (block dims == array dims
    # are always legal). Aim for >= 2 grid steps so v7x's two TensorCores both work.
    TM = min(tm_cap, _round_up(pl.cdiv(B, 2), 128))
    if TM >= B:
        TM = B
    grid = (pl.cdiv(B, TM),)

    cost = pl.CostEstimate(
        flops=2 * B * (D * H + H * C),
        transcendentals=0,
        bytes_accessed=4 * (B * D + B * C + D * H + H + H * C + C),
    )

    out_t = pl.pallas_call(
        _encode_li_kernel,
        out_shape=jax.ShapeDtypeStruct((C, B), x.dtype),
        grid=grid,
        in_specs=[
            pl.BlockSpec((TM, D), lambda i: (i, 0)),  # streamed batch tile of x
            pl.BlockSpec((D, H), lambda i: (0, 0)),   # w1: VMEM-resident
            pl.BlockSpec((1, H), lambda i: (0, 0)),   # b1: VMEM-resident
            pl.BlockSpec((C, H), lambda i: (0, 0)),   # w2 (out,in): VMEM-resident
            pl.BlockSpec((C, 1), lambda i: (0, 0)),   # b2 column: VMEM-resident
        ],
        out_specs=pl.BlockSpec((C, TM), lambda i: (0, i)),
        compiler_params=pltpu.CompilerParams(
            dimension_semantics=("parallel",),
        ),
        cost_estimate=cost,
    )(x, w1, b1, w2, b2)

    return out_t.T  # (B, C)


def init_params(key, data_length, class_num):
    """Params with exactly the PyTorch nn.Linear shapes: weight (out, in), bias (out,)."""
    hidden = int(data_length * 8 / 3)
    k1, k2, k3, k4 = jax.random.split(key, 4)

    def uinit(k, shape, fan_in):
        bound = 1.0 / np.sqrt(fan_in)
        return jax.random.uniform(k, shape, jnp.float32, -bound, bound)

    w1 = uinit(k1, (hidden, data_length), data_length)   # fc_1.weight
    b1 = uinit(k2, (hidden,), data_length)               # fc_1.bias
    w2 = uinit(k3, (class_num, hidden), hidden)          # fc_2.weight
    b2 = uinit(k4, (class_num,), hidden)                 # fc_2.bias
    return (w1, b1, w2, b2)


def prepare_params(params):
    """One-time kernel param prep (runs outside the per-call hot path).

    * fc_1 weight is transposed to (in, out) for the x @ w1 matmul.
    * fc_2 weight stays in PyTorch (out, in) layout (used as a @ b.T in the kernel).
    * Hidden dim padded to a multiple of 128 (exact: zero w1 cols + zero bias ->
      relu -> 0, and zero w2 cols contribute nothing).
    * Biases reshaped: b1 -> (1, Hp) (broadcast over batch sublanes),
      b2 -> (C, 1) (broadcast over batch lanes of the transposed output).
    """
    w1, b1, w2, b2 = params
    H = w1.shape[0]
    Hp = _round_up(max(H, 1), 128)
    w1_t = jnp.transpose(w1)          # (D, H)
    if Hp != H:
        w1_t = jnp.pad(w1_t, ((0, 0), (0, Hp - H)))
        b1 = jnp.pad(b1, ((0, Hp - H),))
        w2 = jnp.pad(w2, ((0, 0), (0, Hp - H)))
    return (w1_t, b1.reshape(1, Hp), w2, b2.reshape(-1, 1))


def ae_encode_li_ref(x, params):
    """Pure-JAX reference (PyTorch-shaped params) for correctness checking."""
    w1, b1, w2, b2 = params
    h = jnp.maximum(x @ w1.T + b1, 0.0)
    return jnp.maximum(h @ w2.T + b2, 0.0)


if __name__ == "__main__":
    data_length = 48            # -> hidden = int(48 * 8 / 3) = 128
    class_num = 8
    batch = 8

    key = jax.random.PRNGKey(0)
    kx, kp = jax.random.split(key)
    x = jax.random.normal(kx, (batch, data_length), jnp.float32)
    params = init_params(kp, data_length, class_num)
    kparams = prepare_params(params)   # one-time prep, outside the hot path

    enc = ae_encode_li(x, kparams)
    jax.block_until_ready(enc)
    np.testing.assert_allclose(np.asarray(enc),
                               np.asarray(ae_encode_li_ref(x, params)),
                               rtol=1e-5, atol=1e-5)

    # batch not a multiple of 8 (single full-batch tile; block dims == array dims)
    x2 = jax.random.normal(kx, (37, data_length), jnp.float32)
    enc2 = ae_encode_li(x2, kparams)
    jax.block_until_ready(enc2)
    np.testing.assert_allclose(np.asarray(enc2),
                               np.asarray(ae_encode_li_ref(x2, params)),
                               rtol=1e-5, atol=1e-5)

    # batch large enough for >= 2 grid steps with a ragged last tile
    x3 = jax.random.normal(kx, (300, data_length), jnp.float32)
    enc3 = ae_encode_li(x3, kparams)
    jax.block_until_ready(enc3)
    np.testing.assert_allclose(np.asarray(enc3),
                               np.asarray(ae_encode_li_ref(x3, params)),
                               rtol=1e-5, atol=1e-5)

    print("KERNEL_OK")
</pallas_src>

<mosaic_0001>
module attributes {stable_mosaic.version = 11 : i64} {
  func.func @_encode_li_kernel(%arg0: i32, %arg1: memref<8x48xf32, #tpu.memory_space<vmem>>, %arg2: memref<48x128xf32, #tpu.memory_space<vmem>>, %arg3: memref<1x128xf32, #tpu.memory_space<vmem>>, %arg4: memref<8x128xf32, #tpu.memory_space<vmem>>, %arg5: memref<8x1xf32, #tpu.memory_space<vmem>>, %arg6: memref<8x8xf32, #tpu.memory_space<vmem>>) attributes {dimension_semantics = [#tpu.dimension_semantics<parallel>], iteration_bounds = array<i64: 1>, scalar_prefetch = 0 : i64, scratch_operands = 0 : i64, tpu.core_type = #tpu.core_type<tc>, window_params = [{transform_indices = @transform_0, window_bounds = array<i64: 8, 48>}, {pipeline_mode = #tpu.pipeline_mode<synchronous>, transform_indices = @transform_1, window_bounds = array<i64: 48, 128>}, {pipeline_mode = #tpu.pipeline_mode<synchronous>, transform_indices = @transform_2, window_bounds = array<i64: 1, 128>}, {pipeline_mode = #tpu.pipeline_mode<synchronous>, transform_indices = @transform_3, window_bounds = array<i64: 8, 128>}, {pipeline_mode = #tpu.pipeline_mode<synchronous>, transform_indices = @transform_4, window_bounds = array<i64: 8, 1>}, {transform_indices = @transform_5, window_bounds = array<i64: 8, 8>}]} {
    %c0 = arith.constant 0 : index
    %c0_0 = arith.constant 0 : index
    %0 = vector.load %arg1[%c0, %c0_0] : memref<8x48xf32, #tpu.memory_space<vmem>>, vector<8x48xf32>
    %c0_1 = arith.constant 0 : index
    %c0_2 = arith.constant 0 : index
    %1 = vector.load %arg2[%c0_1, %c0_2] : memref<48x128xf32, #tpu.memory_space<vmem>>, vector<48x128xf32>
    %cst = arith.constant dense<0.000000e+00> : vector<8x128xf32>
    %2 = tpu.matmul %0, %1, %cst {dimension_numbers = #tpu.dot_dimension_numbers<[1], [0], [0], [1], [0, 0, 1, 1], [], []>} : vector<8x48xf32>, vector<48x128xf32>, vector<8x128xf32> -> vector<8x128xf32>
    %c0_3 = arith.constant 0 : index
    %c0_4 = arith.constant 0 : index
    %3 = vector.load %arg3[%c0_3, %c0_4] : memref<1x128xf32, #tpu.memory_space<vmem>>, vector<1x128xf32>
    %4 = vector.broadcast %3 : vector<1x128xf32> to vector<8x128xf32>
    %5 = arith.addf %2, %4 : vector<8x128xf32>
    %cst_5 = arith.constant 0.000000e+00 : f32
    %6 = vector.broadcast %cst_5 : f32 to vector<8x128xf32>
    %7 = arith.maximumf %5, %6 : vector<8x128xf32>
    %c0_6 = arith.constant 0 : index
    %c0_7 = arith.constant 0 : index
    %8 = vector.load %arg4[%c0_6, %c0_7] : memref<8x128xf32, #tpu.memory_space<vmem>>, vector<8x128xf32>
    %cst_8 = arith.constant dense<0.000000e+00> : vector<8x8xf32>
    %9 = tpu.matmul %8, %7, %cst_8 {dimension_numbers = #tpu.dot_dimension_numbers<[1], [1], [0], [0], [0, 0, 1, 0], [], []>} : vector<8x128xf32>, vector<8x128xf32>, vector<8x8xf32> -> vector<8x8xf32>
    %c0_9 = arith.constant 0 : index
    %c0_10 = arith.constant 0 : index
    %10 = vector.load %arg5[%c0_9, %c0_10] : memref<8x1xf32, #tpu.memory_space<vmem>>, vector<8x1xf32>
    %11 = vector.broadcast %10 : vector<8x1xf32> to vector<8x8xf32>
    %12 = arith.addf %9, %11 : vector<8x8xf32>
    %cst_11 = arith.constant 0.000000e+00 : f32
    %13 = vector.broadcast %cst_11 : f32 to vector<8x8xf32>
    %14 = arith.maximumf %12, %13 : vector<8x8xf32>
    %c0_12 = arith.constant 0 : index
    %c0_13 = arith.constant 0 : index
    %15 = vector.load %arg6[%c0_12, %c0_13] : memref<8x8xf32, #tpu.memory_space<vmem>>, vector<8x8xf32>
    tpu.vector_store %arg6[%c0_12, %c0_13], %14 {strides = array<i32>} : memref<8x8xf32, #tpu.memory_space<vmem>>, vector<8x8xf32>,
    return
  }
  func.func @transform_0(%arg0: i32) -> (i32, i32) {
    %c0_i32 = arith.constant 0 : i32
    %c0_i32_0 = arith.constant 0 : i32
    return %arg0, %c0_i32 : i32, i32
  }
  func.func @transform_1(%arg0: i32) -> (i32, i32) {
    %c0_i32 = arith.constant 0 : i32
    %c0_i32_0 = arith.constant 0 : i32
    %c0_i32_1 = arith.constant 0 : i32
    return %c0_i32, %c0_i32_0 : i32, i32
  }
  func.func @transform_2(%arg0: i32) -> (i32, i32) {
    %c0_i32 = arith.constant 0 : i32
    %c0_i32_0 = arith.constant 0 : i32
    %c0_i32_1 = arith.constant 0 : i32
    return %c0_i32, %c0_i32_0 : i32, i32
  }
  func.func @transform_3(%arg0: i32) -> (i32, i32) {
    %c0_i32 = arith.constant 0 : i32
    %c0_i32_0 = arith.constant 0 : i32
    %c0_i32_1 = arith.constant 0 : i32
    return %c0_i32, %c0_i32_0 : i32, i32
  }
  func.func @transform_4(%arg0: i32) -> (i32, i32) {
    %c0_i32 = arith.constant 0 : i32
    %c0_i32_0 = arith.constant 0 : i32
    %c0_i32_1 = arith.constant 0 : i32
    return %c0_i32, %c0_i32_0 : i32, i32
  }
  func.func @transform_5(%arg0: i32) -> (i32, i32) {
    %c0_i32 = arith.constant 0 : i32
    %c0_i32_0 = arith.constant 0 : i32
    return %c0_i32, %arg0 : i32, i32
  }
}

</mosaic_0001>

<bundles_post_ra>
// kernel: ae_encode_li.1
= control target key start
LH: loop header
LB: loop body
LE: loop exit
PB: predicated region body
PF: predicated region fallthrough
CT: control target
= control target key end

     0   :  { %10 = vsyncpa [#allocation3], 0  ;;  %s359_s0 = inlined_call_operand.vmem [shape: f32[8,48], index: 0, kind: input, shape index: {}]   ;;  %s360_s1 = inlined_call_operand.hbm [shape: f32[48,128], index: 1, kind: input, shape index: {}]   ;;  %s361_s2 = inlined_call_operand.vmem [shape: f32[1,128], index: 2, kind: input, shape index: {}]   ;;  %s362_s3 = inlined_call_operand.hbm [shape: f32[8,128], index: 3, kind: input, shape index: {}]   ;;  %s363_s4 = inlined_call_operand.vmem [shape: f32[8,1], index: 4, kind: input, shape index: {}]   ;;  %s364_s5 = inlined_call_operand.vmem [shape: f32[8,8], index: 5, kind: output, shape index: {}]  }
   0x1   :  { %11 = vsyncpa [#allocation5], 0  ;;  %s304_s18 = smov [#allocation2]  }
   0x2   :  { %s19_s19 = sshll.u32 %s304_s18, 4  ;;  %s20_s19 = int_to_ptr.vmem [resolvable:$true] %s19_s19 }
   0x3   :  { %s268_s20 = scalar_lea.vmem %s20_s19, 768  ;;  %p273_p1 = scmp.lt.s32.totalorder %s20_s19, %s20_s19 }
   0x4   :  { %p269_p0 = scmp.ne.s32.totalorder %s20_s19, %s268_s20  ;;  %p274_p2 = scmp.lt.s32.totalorder %s268_s20, %s268_s20 }
   0x6   :  { %p275_p3 = por %p274_p2, %p273_p1 }
   0x8   :  { %p276_p4 = pnand %p275_p3, %p269_p0 }
   0xa   :  { %279 = shalt.err (!%p276_p4)
}
   0xb   :  { %s305_s21 = smov 128   ;;  %s306_s22 = smov 8  }
   0xc   :  { %25 = dma.hbm_to_vmem [thread:$0]  %s360_s1, 768, %s20_s19, [#allocation3], %s305_s21, %s305_s21, %s306_s22  }
   0xd   :  { %s307_s25 = smov [#allocation4]  }
   0xe   :  { %s34_s26 = sshll.u32 %s307_s25, 4  ;;  %s35_s26 = int_to_ptr.vmem [resolvable:$true] %s34_s26 }
   0xf   :  { %s288_s27 = scalar_lea.vmem %s35_s26, 128  ;;  %p293_p6 = scmp.lt.s32.totalorder %s35_s26, %s35_s26 }
  0x10   :  { %p289_p5 = scmp.ne.s32.totalorder %s35_s26, %s288_s27  ;;  %p294_p7 = scmp.lt.s32.totalorder %s288_s27, %s288_s27 }
  0x12   :  { %p295_p8 = por %p294_p7, %p293_p6 }
  0x14   :  { %p296_p9 = pnand %p295_p8, %p289_p5 }
  0x16   :  { %299 = shalt.err (!%p296_p9)
}
  0x17   :  { %37 = dma.hbm_to_vmem [thread:$0]  %s362_s3, 128, %s35_s26, [#allocation5]  }
  0x18   :  { %300 = dma.done.wait [#allocation3], 768  }
  0x19   :  { %301 = vsyncadd [#allocation3], 4294966528 }
  0x1a   :  { %302 = dma.done.wait [#allocation5], 128  }
  0x1b   :  { %303 = vsyncadd [#allocation5], 4294967168  ;;  %v308_v0 = vmov 0.0   ;;  %vm309_vm0 = vmmov 0   ;;  %v52_v1 = vld [vmem:[#allocation2 + $0x28] sm:$0xff]  ;;  %v51_v2 = vld [vmem:[#allocation2 + $0x20] sm:$0xff] }
  0x1c   :  { %232 = vmatprep.subr.mxu0 %v308_v0  ;;  %244 = vmatprep.mubr.msk.f32.mxu0 %vm309_vm0, %v308_v0  ;;  %v50_v3 = vld [vmem:[#allocation2 + $0x18] sm:$0xff]  ;;  %v49_v4 = vld [vmem:[#allocation2 + $0x10] sm:$0xff]  ;;  %v48_v5 = vld [vmem:[#allocation2 + $0x8] sm:$0xff]  ;;  %vm60_vm1 = vcmask 392192   ;;  %v310_v9 = vmov 0   ;;  %vm213_vm2 = vcmask 64512  }
  0x1d   :  { %247 = vmatprep.subr.mxu1 %v308_v0  ;;  %249 = vmatprep.mubr.msk.f32.mxu1 %vm309_vm0, %v308_v0  ;;  %v47_v6 = vld [vmem:[#allocation2] sm:$0xff]  ;;  %v135_v15 = vld [vmem:[#allocation4] sm:$0xff] }
  0x1e   :  { %233 = vmatpush3.msra.mxu0 %v52_v1  ;;  %v46_v7 = vld [vmem:[%s359_s0] sm:$0xff]  ;;  %259 = vset.pattern.permute.xlu0 %v310_v9 }
  0x1f   :  { %234 = vmatprep.subr.mxu0 %v308_v0  ;;  %v136_v8 = vld [vmem:[%s363_s4] sm:$0xff] }
  0x20   :  { %235 = vmatpush3.msra.mxu0 %v51_v2  ;;  %139 = vperm.xlu0 %259, %v136_v8   ;;  %v221_v10 = vld [vmem:[%s361_s2] ss:$0 sm:$0xff] }
  0x21   :  { %236 = vmatprep.subr.mxu0 %v308_v0 }
  0x22   :  { %237 = vmatpush3.msra.mxu0 %v50_v3 }
  0x23   :  { %238 = vmatprep.subr.mxu0 %v308_v0 }
  0x24   :  { %239 = vmatpush3.msra.mxu0 %v49_v4 }
  0x25   :  { %240 = vmatprep.subr.mxu0 %v308_v0 }
  0x26   :  { %241 = vmatpush3.msra.mxu0 %v48_v5 }
  0x27   :  { %242 = vmatprep.subr.mxu0 %v308_v0 }
  0x28   :  { %243 = vmatpush3.msra.mxu0 %v47_v6 }
  0x29   :  { %245 = vmatmul.mubr.msk.f32.vlgmr.msra.gmra.mxu0 %vm60_vm1, %v46_v7 }
  0x9b   :  { %v140_v16 = vpop.permute.xlu0 %139 }
  0xe9   :  { %v130_v11 = vpop.f32.mrf.mxu0 }
  0xea   :  { %v131_v12 = vadd.f32 %v221_v10, %v130_v11 }
  0xeb   :  { %v246_v13 = vpop.f32.mrf.mxu0 }
  0xec   :  { %v134_v14 = vmax.f32 %v131_v12, 0.0 }
  0xee   :  { %248 = vmatpush3.xpose.msra.mxu1 %v134_v14 }
  0xf1   :  { %250 = vmatmul.mubr.f32.vlgmr.msra.gmra.mxu1 %v135_v15 }
 0x1b1   :  { %v208_v17 = vpop.f32.mrf.mxu1 }
 0x1b2   :  { %v209_v18 = vadd.f32 %v208_v17, %v140_v16 }
 0x1b3   :  { %v251_v19 = vpop.f32.mrf.mxu1 }
 0x1b4   :  { %v212_v20 = vmax.f32 %v209_v18, 0.0 }
 0x1b6   :  { %214 = vst.msk [vmem:[%s364_s5] sm:$0xff] %vm213_vm2, %v212_v20 }
 0x1b7   :  { %219 = vsyncpa [#allocation3], 1 }
 0x1b8   :  { %220 = vsyncpa [#allocation5], 1 }

</bundles_post_ra>
